<compile_context>
chip_gen: v7x
topology: tpu7x:2x2x1
jax: 0.10.0
libtpu: 0.0.40
codegen_flags: <defaults>
</compile_context>

<pallas_src>
import functools
import math

import jax
import jax.numpy as jnp
from jax import lax
from jax.experimental import pallas as pl
from jax.experimental.pallas import tpu as pltpu

MAX_TILE_ROWS = 2048   # sublanes per grid step (f32: 1 MiB block; sweepable 1024/2048/4096)
NUM_SLABS = 3          # [0]=sum(conf loss), [1]=sum(conf mask), [2]=sum(noisy loss)


def _num_tensorcores() -> int:
    """1 on single-TC chips (v5e/v6e); 2 on megacore-style parts (v7x/v4/v5p)."""
    try:
        kind = jax.devices()[0].device_kind.lower()
    except Exception:
        return 1
    if "v7" in kind or "v5p" in kind or ("v4" in kind and "lite" not in kind):
        return 2
    return 1


def _combined_noisy_loss_kernel(x_ref, acc_ref, *, t_lo, t_hi, n_valid,
                                blocks_per_core, tile_rows, num_blocks,
                                last_needs_mask):
    """Per-tile: logit-space confidence masks, elementwise losses, masked partial sums.

    acc_ref: (NUM_SLABS, 8, 128) f32, resident across the "arbitrary" grid axis,
    one block per core along the leading "parallel" axis.
    """
    i = pl.program_id(1)

    @pl.when(i == 0)
    def _():
        acc_ref[...] = jnp.zeros_like(acc_ref)

    p = pl.program_id(0)
    blk = p * blocks_per_core + i               # logical (unclamped) block index

    def tile_reduce(v):
        # (tile_rows, 128) -> (8, 128): sublane-only reshape (free) + VALU adds.
        return jnp.sum(v.reshape(tile_rows // 8, 8, 128), axis=0)

    def accumulate(masked):
        x_raw = x_ref[...].astype(jnp.float32)  # (tile_rows, 128)

        if masked:
            # Last (possibly partial / padded) block only: build a validity mask from
            # the global element index and zero invalid lanes so the math stays finite.
            base = blk * (tile_rows * 128)
            row = lax.broadcasted_iota(jnp.int32, x_raw.shape, 0)
            lane = lax.broadcasted_iota(jnp.int32, x_raw.shape, 1)
            gidx = base + row * 128 + lane
            valid = gidx < n_valid
            x = jnp.where(valid, x_raw, 0.0)
            conf_neg = jnp.logical_and(x < t_lo, valid)   # cmask counts only valid elems
        else:
            x = x_raw
            conf_neg = x < t_lo                 # sigmoid(x) < gamma (logit space, no sigmoid)

        conf_pos = x > t_hi                     # sigmoid(x) > 1 - gamma
        cmask = conf_neg.astype(jnp.float32)
        conf_t = conf_pos.astype(jnp.float32)   # confident targets (for the MSE branch)

        # BCEWithLogits on the confident partition: target there is always 0 and x < 0,
        # so loss == log1p(exp(x)). where() BEFORE exp keeps large positive x finite.
        bce_c = jnp.log1p(jnp.exp(jnp.where(conf_neg, x, 0.0))) * cmask

        # MSELoss on the noisy partition (raw logits vs confident targets).
        d = x - conf_t
        if masked:
            noisy = jnp.logical_and(jnp.logical_not(conf_neg), valid)
            mse_n = jnp.where(noisy, d * d, 0.0)
        else:
            mse_n = jnp.where(conf_neg, 0.0, d * d)

        acc_ref[0] += tile_reduce(bce_c)
        acc_ref[1] += tile_reduce(cmask)
        acc_ref[2] += tile_reduce(mse_n)

    if last_needs_mask:
        if num_blocks > 1:
            @pl.when(blk < num_blocks - 1)      # interior tiles: unmasked fast path
            def _():
                accumulate(masked=False)

        @pl.when(blk == num_blocks - 1)         # exactly one grid step hits this
        def _():
            accumulate(masked=True)
    else:
        @pl.when(blk < num_blocks)              # skip over-provisioned clamped steps
        def _():
            accumulate(masked=False)


def combined_noisy_loss(input_x, target, gamma=0.05, max_tile_rows=MAX_TILE_ROWS,
                        num_cores=None):
    """JAX/Pallas equivalent of CombinedNoisyLoss(BCEWithLogits, MSE).forward with
    NP-style confidence partitioning derived from the input logits.

    `target` is accepted for signature fidelity but unused (as in the accepted prior
    version; targets and the confident mask are derived from the input itself).
    """
    del target  # unused
    x_flat = input_x.reshape(-1)
    n = int(x_flat.shape[0])

    # Only pad when n is not a multiple of 128 (uncommon for NCHW); avoids a full
    # extra HBM read+write of the input for the common case.
    rem = n % 128
    if rem:
        x_flat = jnp.pad(x_flat, (0, 128 - rem))
    rows = x_flat.shape[0] // 128
    x2d = x_flat.reshape(rows, 128)

    # Biggest tile up to max_tile_rows, rounded to a multiple of 8 sublanes.
    tile_rows = int(min(max_tile_rows, ((rows + 7) // 8) * 8))
    num_blocks = int(pl.cdiv(rows, tile_rows))

    if num_cores is None:
        num_cores = _num_tensorcores()
    num_cores = max(1, min(int(num_cores), num_blocks))
    bpc = int(pl.cdiv(num_blocks, num_cores))   # row-blocks per core

    # The validity mask is only needed when the last block overhangs the real data.
    last_needs_mask = (num_blocks * tile_rows * 128) != n

    t_lo = math.log(gamma / (1.0 - gamma))      # logit(gamma)
    t_hi = -t_lo                                # logit(1 - gamma)

    kernel = functools.partial(
        _combined_noisy_loss_kernel,
        t_lo=float(t_lo), t_hi=float(t_hi), n_valid=n,
        blocks_per_core=bpc, tile_rows=tile_rows, num_blocks=num_blocks,
        last_needs_mask=last_needs_mask)

    def x_index_map(p, i):
        # Clamp so over-provisioned (p, i) steps re-read the last valid block; those
        # steps are fully skipped inside the kernel via pl.when(blk < num_blocks).
        return (jnp.minimum(p * bpc + i, num_blocks - 1), 0)

    acc = pl.pallas_call(
        kernel,
        out_shape=jax.ShapeDtypeStruct((num_cores, NUM_SLABS, 8, 128), jnp.float32),
        grid=(num_cores, bpc),
        in_specs=[pl.BlockSpec((tile_rows, 128), x_index_map)],
        out_specs=pl.BlockSpec((None, NUM_SLABS, 8, 128), lambda p, i: (p, 0, 0, 0)),
        compiler_params=pltpu.CompilerParams(
            dimension_semantics=("parallel", "arbitrary")),
    )(x2d)

    sums = jnp.sum(acc, axis=(0, 2, 3))         # (NUM_SLABS,)
    conf_sum, conf_cnt, noisy_sum = sums[0], sums[1], sums[2]
    noisy_cnt = jnp.float32(n) - conf_cnt       # cmask counts only valid elements

    # masked mean == mean over gathered indices; zero if the partition is empty.
    confident_loss = jnp.where(conf_cnt > 0, conf_sum / jnp.maximum(conf_cnt, 1.0), 0.0)
    noisy_loss = jnp.where(noisy_cnt > 0, noisy_sum / jnp.maximum(noisy_cnt, 1.0), 0.0)

    # Both loss funcs provided -> 0.5 * confident + 0.5 * noisy.
    return 0.5 * confident_loss + 0.5 * noisy_loss


def _reference(input_x, gamma=0.05):
    """Pure-JAX reference of the same semantics (sigmoid-space thresholds)."""
    x = input_x.reshape(-1).astype(jnp.float32)
    pred = jax.nn.sigmoid(x)
    conf_mask = (pred < gamma).astype(jnp.float32)
    conf_t = (pred > (1.0 - gamma)).astype(jnp.float32)
    bce = jnp.maximum(x, 0.0) - x * conf_t + jnp.log1p(jnp.exp(-jnp.abs(x)))
    mse = (x - conf_t) ** 2
    ccnt = jnp.sum(conf_mask)
    ncnt = jnp.sum(1.0 - conf_mask)
    cl = jnp.where(ccnt > 0, jnp.sum(bce * conf_mask) / jnp.maximum(ccnt, 1.0), 0.0)
    nl = jnp.where(ncnt > 0, jnp.sum(mse * (1.0 - conf_mask)) / jnp.maximum(ncnt, 1.0), 0.0)
    return 0.5 * cl + 0.5 * nl


if __name__ == "__main__":
    key = jax.random.PRNGKey(0)
    kx, kt, kr = jax.random.split(key, 3)
    gamma = 0.05

    # NCHW input, small shapes; scale so some sigmoid(x) fall outside (gamma, 1-gamma).
    x = jax.random.normal(kx, (2, 4, 16, 16), dtype=jnp.float32) * 4.0
    target = jax.random.uniform(kt, (2, 4, 16, 16), dtype=jnp.float32)  # unused

    loss = jax.block_until_ready(combined_noisy_loss(x, target, gamma=gamma))
    ref = _reference(x, gamma=gamma)
    assert jnp.allclose(loss, ref, rtol=1e-5, atol=1e-6), (loss, ref)

    # Ragged size (n % 128 != 0) exercises the pad + masked last-block path.
    xr = jax.random.normal(kr, (3, 5, 7, 11), dtype=jnp.float32) * 4.0
    loss_r = jax.block_until_ready(
        combined_noisy_loss(xr, jnp.zeros_like(xr), gamma=gamma))
    ref_r = _reference(xr, gamma=gamma)
    assert jnp.allclose(loss_r, ref_r, rtol=1e-5, atol=1e-6), (loss_r, ref_r)

    # bf16 logits end-to-end (native-dtype HBM read, f32 math in-kernel).
    xb = (jax.random.normal(kx, (2, 4, 16, 16), dtype=jnp.float32) * 4.0).astype(jnp.bfloat16)
    loss_b = jax.block_until_ready(
        combined_noisy_loss(xb, target, gamma=gamma))
    ref_b = _reference(xb, gamma=gamma)
    assert jnp.allclose(loss_b, ref_b, rtol=1e-5, atol=1e-6), (loss_b, ref_b)

    print("KERNEL_OK")
</pallas_src>

<mosaic_0001>
module attributes {stable_mosaic.version = 11 : i64} {
  func.func @_combined_noisy_loss_kernel(%arg0: i32, %arg1: i32, %arg2: memref<16x128xf32, #tpu.memory_space<vmem>>, %arg3: memref<1x3x8x128xf32, #tpu.memory_space<vmem>>) attributes {dimension_semantics = [#tpu.dimension_semantics<parallel>, #tpu.dimension_semantics<arbitrary>], iteration_bounds = array<i64: 1, 1>, scalar_prefetch = 0 : i64, scratch_operands = 0 : i64, tpu.core_type = #tpu.core_type<tc>, window_params = [{transform_indices = @transform_0, window_bounds = array<i64: 16, 128>}, {transform_indices = @transform_1, window_bounds = array<i64: 1, 3, 8, 128>}]} {
    %c0_i32 = arith.constant 0 : i32
    %0 = arith.cmpi eq, %arg1, %c0_i32 : i32
    %1 = arith.extui %0 : i1 to i32
    %c0_i32_0 = arith.constant 0 : i32
    %2 = arith.cmpi ne, %1, %c0_i32_0 : i32
    scf.if %2 {
      %cst = arith.constant 0.000000e+00 : f32
      %8 = vector.broadcast %cst : f32 to vector<3x8x128xf32>
      %c0 = arith.constant 0 : index
      %c0_3 = arith.constant 0 : index
      %c0_4 = arith.constant 0 : index
      %c0_5 = arith.constant 0 : index
      %9 = vector.load %arg3[%c0, %c0_3, %c0_4, %c0_5] : memref<1x3x8x128xf32, #tpu.memory_space<vmem>>, vector<1x3x8x128xf32>
      %10 = vector.shape_cast %9 : vector<1x3x8x128xf32> to vector<3x8x128xf32>
      %11 = vector.shape_cast %8 : vector<3x8x128xf32> to vector<1x3x8x128xf32>
      tpu.vector_store %arg3[%c0, %c0_3, %c0_4, %c0_5], %11 {strides = array<i32>} : memref<1x3x8x128xf32, #tpu.memory_space<vmem>>, vector<1x3x8x128xf32>,
    } else {
    }
    %c1_i32 = arith.constant 1 : i32
    %3 = arith.muli %arg0, %c1_i32 : i32
    %4 = arith.addi %3, %arg1 : i32
    %c1_i32_1 = arith.constant 1 : i32
    %5 = arith.cmpi slt, %4, %c1_i32_1 : i32
    %6 = arith.extui %5 : i1 to i32
    %c0_i32_2 = arith.constant 0 : i32
    %7 = arith.cmpi ne, %6, %c0_i32_2 : i32
    scf.if %7 {
      %c0 = arith.constant 0 : index
      %c0_3 = arith.constant 0 : index
      %8 = vector.load %arg2[%c0, %c0_3] : memref<16x128xf32, #tpu.memory_space<vmem>>, vector<16x128xf32>
      %cst = arith.constant -2.94443893 : f32
      %9 = vector.broadcast %cst : f32 to vector<16x128xf32>
      %10 = arith.cmpf olt, %8, %9 : vector<16x128xf32>
      %cst_4 = arith.constant 2.94443893 : f32
      %11 = vector.broadcast %cst_4 : f32 to vector<16x128xf32>
      %12 = arith.cmpf ogt, %8, %11 : vector<16x128xf32>
      %13 = arith.extui %10 : vector<16x128xi1> to vector<16x128xi32>
      %14 = arith.sitofp %13 : vector<16x128xi32> to vector<16x128xf32>
      %15 = arith.extui %12 : vector<16x128xi1> to vector<16x128xi32>
      %16 = arith.sitofp %15 : vector<16x128xi32> to vector<16x128xf32>
      %cst_5 = arith.constant 0.000000e+00 : f32
      %17 = vector.broadcast %cst_5 : f32 to vector<16x128xf32>
      %18 = arith.select %10, %8, %17 : vector<16x128xi1>, vector<16x128xf32>
      %19 = math.exp %18 : vector<16x128xf32>
      %20 = math.log1p %19 : vector<16x128xf32>
      %21 = arith.mulf %20, %14 : vector<16x128xf32>
      %22 = arith.subf %8, %16 : vector<16x128xf32>
      %23 = arith.mulf %22, %22 : vector<16x128xf32>
      %cst_6 = arith.constant 0.000000e+00 : f32
      %24 = vector.broadcast %cst_6 : f32 to vector<16x128xf32>
      %25 = arith.select %10, %24, %23 : vector<16x128xi1>, vector<16x128xf32>
      %c0_7 = arith.constant 0 : index
      %c0_8 = arith.constant 0 : index
      %c0_9 = arith.constant 0 : index
      %c0_10 = arith.constant 0 : index
      %26 = vector.load %arg3[%c0_7, %c0_8, %c0_9, %c0_10] : memref<1x3x8x128xf32, #tpu.memory_space<vmem>>, vector<1x1x8x128xf32>
      %27 = vector.shape_cast %26 : vector<1x1x8x128xf32> to vector<8x128xf32>
      %28 = vector.shape_cast %21 : vector<16x128xf32> to vector<2x8x128xf32>
      %cst_11 = arith.constant dense<0.000000e+00> : vector<8x128xf32>
      %29 = vector.multi_reduction <add>, %28, %cst_11 [0] : vector<2x8x128xf32> to vector<8x128xf32>
      %30 = arith.addf %27, %29 : vector<8x128xf32>
      %c0_12 = arith.constant 0 : index
      %c0_13 = arith.constant 0 : index
      %c0_14 = arith.constant 0 : index
      %c0_15 = arith.constant 0 : index
      %31 = vector.load %arg3[%c0_12, %c0_13, %c0_14, %c0_15] : memref<1x3x8x128xf32, #tpu.memory_space<vmem>>, vector<1x1x8x128xf32>
      %32 = vector.shape_cast %31 : vector<1x1x8x128xf32> to vector<8x128xf32>
      %33 = vector.shape_cast %30 : vector<8x128xf32> to vector<1x1x8x128xf32>
      tpu.vector_store %arg3[%c0_12, %c0_13, %c0_14, %c0_15], %33 {strides = array<i32>} : memref<1x3x8x128xf32, #tpu.memory_space<vmem>>, vector<1x1x8x128xf32>,
      %c0_16 = arith.constant 0 : index
      %c1 = arith.constant 1 : index
      %c0_17 = arith.constant 0 : index
      %c0_18 = arith.constant 0 : index
      %34 = vector.load %arg3[%c0_16, %c1, %c0_17, %c0_18] : memref<1x3x8x128xf32, #tpu.memory_space<vmem>>, vector<1x1x8x128xf32>
      %35 = vector.shape_cast %34 : vector<1x1x8x128xf32> to vector<8x128xf32>
      %36 = vector.shape_cast %14 : vector<16x128xf32> to vector<2x8x128xf32>
      %cst_19 = arith.constant dense<0.000000e+00> : vector<8x128xf32>
      %37 = vector.multi_reduction <add>, %36, %cst_19 [0] : vector<2x8x128xf32> to vector<8x128xf32>
      %38 = arith.addf %35, %37 : vector<8x128xf32>
      %c0_20 = arith.constant 0 : index
      %c1_21 = arith.constant 1 : index
      %c0_22 = arith.constant 0 : index
      %c0_23 = arith.constant 0 : index
      %39 = vector.load %arg3[%c0_20, %c1_21, %c0_22, %c0_23] : memref<1x3x8x128xf32, #tpu.memory_space<vmem>>, vector<1x1x8x128xf32>
      %40 = vector.shape_cast %39 : vector<1x1x8x128xf32> to vector<8x128xf32>
      %41 = vector.shape_cast %38 : vector<8x128xf32> to vector<1x1x8x128xf32>
      tpu.vector_store %arg3[%c0_20, %c1_21, %c0_22, %c0_23], %41 {strides = array<i32>} : memref<1x3x8x128xf32, #tpu.memory_space<vmem>>, vector<1x1x8x128xf32>,
      %c0_24 = arith.constant 0 : index
      %c2 = arith.constant 2 : index
      %c0_25 = arith.constant 0 : index
      %c0_26 = arith.constant 0 : index
      %42 = vector.load %arg3[%c0_24, %c2, %c0_25, %c0_26] : memref<1x3x8x128xf32, #tpu.memory_space<vmem>>, vector<1x1x8x128xf32>
      %43 = vector.shape_cast %42 : vector<1x1x8x128xf32> to vector<8x128xf32>
      %44 = vector.shape_cast %25 : vector<16x128xf32> to vector<2x8x128xf32>
      %cst_27 = arith.constant dense<0.000000e+00> : vector<8x128xf32>
      %45 = vector.multi_reduction <add>, %44, %cst_27 [0] : vector<2x8x128xf32> to vector<8x128xf32>
      %46 = arith.addf %43, %45 : vector<8x128xf32>
      %c0_28 = arith.constant 0 : index
      %c2_29 = arith.constant 2 : index
      %c0_30 = arith.constant 0 : index
      %c0_31 = arith.constant 0 : index
      %47 = vector.load %arg3[%c0_28, %c2_29, %c0_30, %c0_31] : memref<1x3x8x128xf32, #tpu.memory_space<vmem>>, vector<1x1x8x128xf32>
      %48 = vector.shape_cast %47 : vector<1x1x8x128xf32> to vector<8x128xf32>
      %49 = vector.shape_cast %46 : vector<8x128xf32> to vector<1x1x8x128xf32>
      tpu.vector_store %arg3[%c0_28, %c2_29, %c0_30, %c0_31], %49 {strides = array<i32>} : memref<1x3x8x128xf32, #tpu.memory_space<vmem>>, vector<1x1x8x128xf32>,
    } else {
    }
    return
  }
  func.func @transform_0(%arg0: i32, %arg1: i32) -> (i32, i32) {
    %c1_i32 = arith.constant 1 : i32
    %0 = arith.muli %arg0, %c1_i32 : i32
    %1 = arith.addi %0, %arg1 : i32
    %c0_i32 = arith.constant 0 : i32
    %2 = arith.minsi %1, %c0_i32 : i32
    %c0_i32_0 = arith.constant 0 : i32
    %c0_i32_1 = arith.constant 0 : i32
    return %2, %c0_i32_0 : i32, i32
  }
  func.func @transform_1(%arg0: i32, %arg1: i32) -> (i32, i32, i32, i32) {
    %c0_i32 = arith.constant 0 : i32
    %c0_i32_0 = arith.constant 0 : i32
    %c0_i32_1 = arith.constant 0 : i32
    %c0_i32_2 = arith.constant 0 : i32
    return %arg0, %c0_i32, %c0_i32_0, %c0_i32_1 : i32, i32, i32, i32
  }
}

</mosaic_0001>

<bundles_post_ra>
// kernel: tpu_custom_call.1
= control target key start
LH: loop header
LB: loop body
LE: loop exit
PB: predicated region body
PF: predicated region fallthrough
CT: control target
= control target key end

     0   :  { %6 = vsyncpa [#allocation3], 0  ;;  %s240_s0 = inlined_call_operand.hbm [shape: f32[16,128], index: 0, kind: input, shape index: {}]   ;;  %s241_s1 = inlined_call_operand.hbm [shape: f32[1,3,8,128], index: 1, kind: output, shape index: {}]  }
   0x1   :  { %7 = vsyncpa [#allocation4], 0  ;;  %s189_s6 = smov [#allocation2]   ;;  %s141_s10 = scalar_lea.hbm %s240_s0, 256 }
   0x2   :  { %s19_s7 = sshll.u32 %s189_s6, 4  ;;  %p142_p0 = scmp.ne.s32.totalorder %s240_s0, %s141_s10  ;;  %s20_s7 = int_to_ptr.vmem [resolvable:$true] %s19_s7 }
   0x3   :  { %p145_p1 = scmp.lt.u32.totalorder %s141_s10, %s240_s0 }
   0x5   :  { %p147_p2 = pnand %p145_p1, %p142_p0 }
   0x7   :  { %150 = shalt.err (!%p147_p2)
}
   0x8   :  { %s151_s15 = scalar_lea.vmem %s20_s7, 256  ;;  %p156_p4 = scmp.lt.s32.totalorder %s20_s7, %s20_s7 }
   0x9   :  { %p152_p3 = scmp.ne.s32.totalorder %s20_s7, %s151_s15  ;;  %p157_p5 = scmp.lt.s32.totalorder %s151_s15, %s151_s15 }
   0xb   :  { %p158_p6 = por %p157_p5, %p156_p4 }
   0xd   :  { %p159_p7 = pnand %p158_p6, %p152_p3 }
   0xf   :  { %162 = shalt.err (!%p159_p7)
}
  0x10   :  { %s190_s16 = smov 128   ;;  %s191_s17 = smov 8  }
  0x11   :  { %25 = dma.hbm_to_vmem [thread:$0]  %s240_s0, 256, %s20_s7, [#allocation3], %s190_s16, %s190_s16, %s191_s17  }
  0x12   :  { %185 = dma.done.wait [#allocation3], 256  }
  0x13   :  { %186 = vsyncadd [#allocation3], 4294967040  ;;  %v45_v0 = vld [vmem:[#allocation2] sm:$0xff]  ;;  %v46_v1 = vld [vmem:[#allocation2 + $0x8] sm:$0xff]  ;;  %v192_v2 = vmov 0.0   ;;  %s193_s0 = smov [#allocation5]  }
  0x14   :  { %vm47_vm0 = vcmp.lt.f32.partialorder %v45_v0, -2.944439  ;;  %vm48_vm1 = vcmp.lt.f32.partialorder %v46_v1, -2.944439  ;;  %vm49_vm2 = vcmp.gt.f32.partialorder %v45_v0, 2.944439 }
  0x15   :  { %v124_v3 = vsel %vm47_vm0, 1.0, %v192_v2  ;;  %v125_v4 = vsel %vm48_vm1, 1.0, %v192_v2  ;;  %v59_v5 = vsel %vm47_vm0, %v45_v0, 0.0  ;;  %v60_v6 = vsel %vm48_vm1, %v46_v1, 0.0  ;;  %s110_s20 = sshll.u32 %s193_s0, 4  ;;  %s111_s20 = int_to_ptr.vmem [resolvable:$true] %s110_s20 }
  0x16   :  { %v61_v7 = vmul.f32 1.442695, %v59_v5  ;;  %v63_v8 = vmul.f32 1.442695, %v60_v6  ;;  %v97_v9 = vadd.f32 %v125_v4, %v124_v3  ;;  %vm50_vm3 = vcmp.gt.f32.partialorder %v46_v1, 2.944439  ;;  %p168_p9 = scmp.lt.s32.totalorder %s111_s20, %s111_s20 }
  0x17   :  { %v126_v10 = vsel %vm49_vm2, 1.0, %v192_v2  ;;  %v127_v11 = vsel %vm50_vm3, 1.0, %v192_v2  ;;  %s163_s21 = scalar_lea.vmem %s111_s20, 384 }
  0x18   :  { %133 = vpow2.f32 %v61_v7  ;;  %v85_v12 = vsub.f32 %v45_v0, %v126_v10  ;;  %v86_v13 = vsub.f32 %v46_v1, %v127_v11  ;;  %99 = vst [vmem:[#allocation5 + $0x8] sm:$0xff] %v97_v9  ;;  %p164_p8 = scmp.ne.s32.totalorder %s111_s20, %s163_s21  ;;  %p169_p10 = scmp.lt.s32.totalorder %s163_s21, %s163_s21 }
  0x19   :  { %135 = vpow2.f32 %v63_v8 }
  0x1a   :  { %v87_v14 = vmul.f32 %v85_v12, %v85_v12  ;;  %v88_v15 = vmul.f32 %v86_v13, %v86_v13  ;;  %p170_p11 = por %p169_p10, %p168_p9 }
  0x1c   :  { %v89_v16 = vsel %vm47_vm0, 0.0, %v87_v14  ;;  %v90_v17 = vsel %vm48_vm1, 0.0, %v88_v15  ;;  %p171_p12 = pnand %p170_p11, %p164_p8 }
  0x1d   :  { %v102_v18 = vadd.f32 %v90_v17, %v89_v16 }
  0x1f   :  { %104 = vst [vmem:[#allocation5 + $0x10] sm:$0xff] %v102_v18 }
  0x22   :  { %v134_v19 = vpop.eup %133 }
  0x23   :  { %v136_v20 = vpop.eup %135  ;;  %v65_v21 = vadd.f32 1.0, %v134_v19  ;;  %v68_v23 = vmul.f32 -0.5, %v134_v19  ;;  %v71_v26 = vand.u32 2147483647, %v134_v19 }
  0x24   :  { %v74_v22 = vadd.f32 1.0, %v136_v20  ;;  %v77_v24 = vmul.f32 -0.5, %v136_v20  ;;  %v80_v28 = vand.u32 2147483647, %v136_v20 }
  0x25   :  { %137 = vlog2.f32 %v65_v21  ;;  %v69_v25 = vadd.f32 1.0, %v68_v23  ;;  %vm72_vm4 = vcmp.lt.f32.partialorder %v71_v26, 0.0004427343 }
  0x26   :  { %139 = vlog2.f32 %v74_v22  ;;  %v78_v27 = vadd.f32 1.0, %v77_v24  ;;  %vm81_vm5 = vcmp.lt.f32.partialorder %v80_v28, 0.0004427343 }
  0x27   :  { %v70_v29 = vmul.f32 %v134_v19, %v69_v25 }
  0x28   :  { %v79_v31 = vmul.f32 %v136_v20, %v78_v27 }
  0x2f   :  { %v138_v30 = vpop.eup %137 }
  0x30   :  { %v140_v32 = vpop.eup %139  ;;  %v67_v33 = vmul.f32 0.6931472, %v138_v30 }
  0x31   :  { %v76_v34 = vmul.f32 0.6931472, %v140_v32 }
  0x32   :  { %v73_v35 = vsel %vm72_vm4, %v70_v29, %v67_v33 }
  0x33   :  { %v82_v36 = vsel %vm81_vm5, %v79_v31, %v76_v34  ;;  %v83_v37 = vmul.f32 %v124_v3, %v73_v35 }
  0x34   :  { %v84_v38 = vmul.f32 %v125_v4, %v82_v36 }
  0x36   :  { %v92_v39 = vadd.f32 %v84_v38, %v83_v37 }
  0x38   :  { %94 = vst [vmem:[#allocation5] sm:$0xff] %v92_v39 }
  0x39   :  { %174 = shalt.err (!%p171_p12)
}
  0x3a   :  { %s175_s24 = scalar_lea.hbm %s241_s1, 384 }
  0x3b   :  { %p176_p13 = scmp.ne.s32.totalorder %s241_s1, %s175_s24  ;;  %p179_p0 = scmp.lt.u32.totalorder %s175_s24, %s241_s1 }
  0x3d   :  { %p181_p1 = pnand %p179_p0, %p176_p13 }
  0x3f   :  { %184 = shalt.err (!%p181_p1)
}
  0x40   :  { %116 = dma.vmem_to_hbm [thread:$0]  %s111_s20, 384, %s241_s1, [#allocation4], %s190_s16, %s190_s16, %s191_s17  }
  0x41   :  { %187 = dma.done.wait [#allocation4], 384  }
  0x42   :  { %188 = vsyncadd [#allocation4], 4294966912 }
  0x43   :  { %120 = vsyncpa [#allocation3], 1 }
  0x44   :  { %121 = vsyncpa [#allocation4], 1 }

</bundles_post_ra>
